<compile_context>
chip_gen: v5e
topology: v5e:2x2
jax: 0.10.0
libtpu: 0.0.40
codegen_flags: <defaults>
</compile_context>

<pallas_src>
import functools
import math

import jax
import jax.numpy as jnp
from jax.experimental import pallas as pl
from jax.experimental.pallas import tpu as pltpu


def _head_attention_kernel(x_ref, wt_ref, b_ref, mask_ref, o_ref, *,
                           head_used, att_head_size):
    # x_ref:    (TL, N, C)    bf16  L-tile of hidden_states
    # wt_ref:   (C, 3C)       bf16  in_proj_weight.T (grid-invariant)
    # b_ref:    (1, 3C)       f32   in_proj_bias
    # mask_ref: (TL, 1, N, N) f32   additive mask (head-invariant)
    # o_ref:    (TL, N, C)    f32   context output (padded head slots zero)
    TL, N, C = x_ref.shape
    D = att_head_size
    H = head_used
    inv_sqrt_d = 1.0 / math.sqrt(D)

    # ---- QKV projection: fold (TL, N) into one MXU M dim --------------------
    x2d = x_ref[...].reshape(TL * N, C)                                 # bf16
    qkv = jnp.dot(x2d, wt_ref[...],
                  preferred_element_type=jnp.float32) + b_ref[...]     # (TL*N, 3C) f32

    # ---- head-major batched layout: (H*TL, N, D), batch index b = h*TL + l --
    def heads(base):
        return jnp.stack(
            [qkv[:, base + h * D: base + (h + 1) * D].reshape(TL, N, D)
             for h in range(H)], axis=0).reshape(H * TL, N, D)

    q = (heads(0 * C) * inv_sqrt_d).astype(jnp.bfloat16)   # scale folded into q
    k = heads(1 * C).astype(jnp.bfloat16)
    v = heads(2 * C).astype(jnp.bfloat16)

    # ---- scores + softmax: all heads & L rows in one batched contraction ----
    scores = jnp.einsum('bnd,bmd->bnm', q, k,
                        preferred_element_type=jnp.float32)             # (H*TL, N, N)
    mask3 = mask_ref[...].reshape(TL, N, N)
    scores = scores + jnp.broadcast_to(mask3[None],
                                       (H, TL, N, N)).reshape(H * TL, N, N)
    m = jnp.max(scores, axis=-1, keepdims=True)
    e = jnp.exp(scores - m)
    probs = e * pl.reciprocal(jnp.sum(e, axis=-1, keepdims=True), approx=True)
    # TODO(synk): nn.Dropout(attention_probs_dropout_prob) is identity in eval
    # mode; train-time stochastic dropout is not implemented.

    # ---- context: one batched matmul, one lane-dense (TL, N, C) store -------
    ctx = jnp.einsum('bnm,bmd->bnd', probs.astype(jnp.bfloat16), v,
                     preferred_element_type=jnp.float32)                # (H*TL, N, D)
    parts = [ctx[h * TL:(h + 1) * TL] for h in range(H)]                # (TL, N, D) each
    if H * D != C:
        # unused head slots are zero (mirrors torch.cat with zeros)
        parts.append(jnp.zeros((TL, N, C - H * D), jnp.float32))
    o_ref[...] = jnp.concatenate(parts, axis=-1).astype(o_ref.dtype)


def _block_vmem_bytes(tl, N, C, H, D):
    """Rough VMEM footprint of one grid step (double-buffered I/O + temps)."""
    x_b = tl * N * C * 2                     # bf16 input block
    o_b = tl * N * C * 4                     # f32 output block
    m_b = tl * N * N * 4                     # f32 mask block (head-invariant)
    w_b = C * 3 * C * 2 + 3 * C * 4          # weight (bf16) + bias (f32)
    tmp = (tl * N * 3 * C * 4                # qkv f32
           + 3 * tl * N * H * D * 2          # q / k / v head-major bf16
           + 2 * tl * H * N * N * 4          # scores + probs f32
           + 2 * tl * N * C * 4)             # ctx f32 (+ assembled copy)
    return 2 * (x_b + o_b + m_b) + 2 * w_b + tmp


def _pick_l_tile(L, N, C, H, D, budget_bytes=24 * 1024 * 1024):
    """Largest divisor of L fitting the VMEM budget while keeping >= 2 grid
    steps, so both v7x TensorCores get a slice of the 'parallel' axis."""
    best = 1
    for tl in range(1, L + 1):
        if L % tl:
            continue
        if L // tl < min(2, L):
            continue
        if _block_vmem_bytes(tl, N, C, H, D) <= budget_bytes:
            best = tl
    return best


def head_attention(hidden_states, attention_mask, in_proj_weight, in_proj_bias,
                   *, head_num, head_used, l_tile=None):
    L, N, C = hidden_states.shape
    D = C // head_num                         # attention_head_size
    if l_tile is None:
        l_tile = _pick_l_tile(L, N, C, head_used, D)
    assert L % l_tile == 0
    grid_l = L // l_tile

    # Head-invariant additive mask: keep it (L, 1, N, N) in HBM; the head
    # broadcast happens in-register inside the kernel (no H x mask traffic).
    mask = jnp.broadcast_to(jnp.asarray(attention_mask, jnp.float32),
                            (L, 1, N, N))
    # bf16 operands for the MXU contractions (f32 accumulation in-kernel).
    x = jnp.asarray(hidden_states, jnp.bfloat16)
    wt = jnp.asarray(in_proj_weight, jnp.bfloat16).T          # (C, 3C)
    b = jnp.asarray(in_proj_bias, jnp.float32).reshape(1, 3 * C)

    vmem_limit = int(min(64 * 1024 * 1024,
                         max(32 * 1024 * 1024,
                             2 * _block_vmem_bytes(l_tile, N, C, head_used, D))))

    kernel = functools.partial(_head_attention_kernel,
                               head_used=head_used, att_head_size=D)
    # wt / b index_maps are grid-invariant so Pallas DMAs them only once; for
    # very large C on v7x, pipeline_mode=pl.Buffered(1) on wt would also drop
    # its second VMEM buffer.
    return pl.pallas_call(
        kernel,
        out_shape=jax.ShapeDtypeStruct((L, N, C), jnp.float32),
        grid_spec=pltpu.PrefetchScalarGridSpec(
            num_scalar_prefetch=0,
            grid=(grid_l,),
            in_specs=[
                pl.BlockSpec((l_tile, N, C), lambda l: (l, 0, 0)),
                pl.BlockSpec((C, 3 * C), lambda l: (0, 0)),
                pl.BlockSpec((1, 3 * C), lambda l: (0, 0)),
                pl.BlockSpec((l_tile, 1, N, N), lambda l: (l, 0, 0, 0)),
            ],
            out_specs=pl.BlockSpec((l_tile, N, C), lambda l: (l, 0, 0)),
        ),
        compiler_params=pltpu.CompilerParams(
            dimension_semantics=("parallel",),
            vmem_limit_bytes=vmem_limit),
    )(x, wt, b, mask)


def _reference(hidden, mask, w, b, head_num, head_used):
    """Pure-JAX (f32) mirror of the PyTorch forward (eval mode)."""
    L, N, C = hidden.shape
    D = C // head_num
    qkv = hidden @ w.T + b
    q, k, v = jnp.split(qkv, 3, axis=-1)
    t = lambda a: a.reshape(L, N, head_used, D).transpose(0, 2, 1, 3)
    q, k, v = t(q), t(k), t(v)
    scores = jnp.einsum('lhnd,lhmd->lhnm', q, k,
                        precision=jax.lax.Precision.HIGHEST) / math.sqrt(D)
    scores = scores + mask
    probs = jax.nn.softmax(scores, axis=-1)
    ctx = jnp.einsum('lhnm,lhmd->lhnd', probs, v,
                     precision=jax.lax.Precision.HIGHEST)
    ctx = ctx.transpose(0, 2, 1, 3).reshape(L, N, head_used * D)
    if head_used != head_num:
        pad = jnp.zeros((L, N, (head_num - head_used) * D), ctx.dtype)
        ctx = jnp.concatenate([ctx, pad], axis=-1)
    return ctx


if __name__ == "__main__":
    L, N, C = 8, 2, 32          # seq_len, batch, hidden_size
    head_num = 4
    head_used = 4               # torch .view() requires head_used == head_num
    scale = (C // head_used) ** (-0.5)

    key = jax.random.PRNGKey(0)
    k1, k2, k3 = jax.random.split(key, 3)
    hidden = jax.random.normal(k1, (L, N, C), jnp.float32)
    # additive attention mask, broadcastable to (L, heads, N, N)
    attn_mask = 0.1 * jax.random.normal(k2, (L, 1, N, N), jnp.float32)
    # deterministic parameter init: randn * scale, zero bias (as in __init__)
    in_proj_weight = jax.random.normal(k3, (3 * C, C), jnp.float32) * scale
    in_proj_bias = jnp.zeros((3 * C,), jnp.float32)

    out = head_attention(hidden, attn_mask, in_proj_weight, in_proj_bias,
                         head_num=head_num, head_used=head_used)
    out = jax.block_until_ready(out)

    ref = _reference(hidden, attn_mask, in_proj_weight, in_proj_bias,
                     head_num, head_used)
    assert out.shape == (L, N, C), out.shape
    err = float(jnp.max(jnp.abs(out - ref)))
    # bf16 MXU operands + approx reciprocal vs. an f32 reference.
    assert err < 1e-1, err
    print("KERNEL_OK")
</pallas_src>

<mosaic_0001>
module attributes {stable_mosaic.version = 11 : i64} {
  func.func @_head_attention_kernel(%arg0: i32, %arg1: memref<4x2x32xbf16, #tpu.memory_space<vmem>>, %arg2: memref<32x96xbf16, #tpu.memory_space<vmem>>, %arg3: memref<1x96xf32, #tpu.memory_space<vmem>>, %arg4: memref<4x1x2x2xf32, #tpu.memory_space<vmem>>, %arg5: memref<4x2x32xf32, #tpu.memory_space<vmem>>) attributes {dimension_semantics = [#tpu.dimension_semantics<parallel>], iteration_bounds = array<i64: 2>, scalar_prefetch = 0 : i64, scratch_operands = 0 : i64, tpu.core_type = #tpu.core_type<tc>, window_params = [{transform_indices = @transform_0, window_bounds = array<i64: 4, 2, 32>}, {pipeline_mode = #tpu.pipeline_mode<synchronous>, transform_indices = @transform_1, window_bounds = array<i64: 32, 96>}, {pipeline_mode = #tpu.pipeline_mode<synchronous>, transform_indices = @transform_2, window_bounds = array<i64: 1, 96>}, {transform_indices = @transform_3, window_bounds = array<i64: 4, 1, 2, 2>}, {transform_indices = @transform_4, window_bounds = array<i64: 4, 2, 32>}]} {
    %c0 = arith.constant 0 : index
    %c0_0 = arith.constant 0 : index
    %c0_1 = arith.constant 0 : index
    %0 = vector.load %arg1[%c0, %c0_0, %c0_1] : memref<4x2x32xbf16, #tpu.memory_space<vmem>>, vector<4x2x32xbf16>
    %1 = vector.shape_cast %0 : vector<4x2x32xbf16> to vector<8x32xbf16>
    %c0_2 = arith.constant 0 : index
    %c0_3 = arith.constant 0 : index
    %2 = vector.load %arg2[%c0_2, %c0_3] : memref<32x96xbf16, #tpu.memory_space<vmem>>, vector<32x96xbf16>
    %cst = arith.constant dense<0.000000e+00> : vector<8x96xf32>
    %3 = tpu.matmul %1, %2, %cst {dimension_numbers = #tpu.dot_dimension_numbers<[1], [0], [0], [1], [0, 0, 1, 1], [], []>} : vector<8x32xbf16>, vector<32x96xbf16>, vector<8x96xf32> -> vector<8x96xf32>
    %c0_4 = arith.constant 0 : index
    %c0_5 = arith.constant 0 : index
    %4 = vector.load %arg3[%c0_4, %c0_5] : memref<1x96xf32, #tpu.memory_space<vmem>>, vector<1x96xf32>
    %5 = vector.broadcast %4 : vector<1x96xf32> to vector<8x96xf32>
    %6 = arith.addf %3, %5 : vector<8x96xf32>
    %7 = vector.extract_strided_slice %6 {offsets = [0, 0], sizes = [8, 8], strides = [1, 1]} : vector<8x96xf32> to vector<8x8xf32>
    %8 = vector.shape_cast %7 : vector<8x8xf32> to vector<4x2x8xf32>
    %9 = vector.extract_strided_slice %6 {offsets = [0, 8], sizes = [8, 8], strides = [1, 1]} : vector<8x96xf32> to vector<8x8xf32>
    %10 = vector.shape_cast %9 : vector<8x8xf32> to vector<4x2x8xf32>
    %11 = vector.extract_strided_slice %6 {offsets = [0, 16], sizes = [8, 8], strides = [1, 1]} : vector<8x96xf32> to vector<8x8xf32>
    %12 = vector.shape_cast %11 : vector<8x8xf32> to vector<4x2x8xf32>
    %13 = vector.extract_strided_slice %6 {offsets = [0, 24], sizes = [8, 8], strides = [1, 1]} : vector<8x96xf32> to vector<8x8xf32>
    %14 = vector.shape_cast %13 : vector<8x8xf32> to vector<4x2x8xf32>
    %15 = vector.shape_cast %8 : vector<4x2x8xf32> to vector<1x4x2x8xf32>
    %16 = vector.shape_cast %10 : vector<4x2x8xf32> to vector<1x4x2x8xf32>
    %17 = vector.shape_cast %12 : vector<4x2x8xf32> to vector<1x4x2x8xf32>
    %18 = vector.shape_cast %14 : vector<4x2x8xf32> to vector<1x4x2x8xf32>
    %19 = tpu.concatenate %15, %16, %17, %18 in 0 : vector<1x4x2x8xf32>, vector<1x4x2x8xf32>, vector<1x4x2x8xf32>, vector<1x4x2x8xf32> -> vector<4x4x2x8xf32>
    %20 = vector.shape_cast %19 : vector<4x4x2x8xf32> to vector<16x2x8xf32>
    %cst_6 = arith.constant 0.353553385 : f32
    %21 = vector.broadcast %cst_6 : f32 to vector<16x2x8xf32>
    %22 = arith.mulf %20, %21 : vector<16x2x8xf32>
    %23 = arith.truncf %22 : vector<16x2x8xf32> to vector<16x2x8xbf16>
    %24 = vector.extract_strided_slice %6 {offsets = [0, 32], sizes = [8, 8], strides = [1, 1]} : vector<8x96xf32> to vector<8x8xf32>
    %25 = vector.shape_cast %24 : vector<8x8xf32> to vector<4x2x8xf32>
    %26 = vector.extract_strided_slice %6 {offsets = [0, 40], sizes = [8, 8], strides = [1, 1]} : vector<8x96xf32> to vector<8x8xf32>
    %27 = vector.shape_cast %26 : vector<8x8xf32> to vector<4x2x8xf32>
    %28 = vector.extract_strided_slice %6 {offsets = [0, 48], sizes = [8, 8], strides = [1, 1]} : vector<8x96xf32> to vector<8x8xf32>
    %29 = vector.shape_cast %28 : vector<8x8xf32> to vector<4x2x8xf32>
    %30 = vector.extract_strided_slice %6 {offsets = [0, 56], sizes = [8, 8], strides = [1, 1]} : vector<8x96xf32> to vector<8x8xf32>
    %31 = vector.shape_cast %30 : vector<8x8xf32> to vector<4x2x8xf32>
    %32 = vector.shape_cast %25 : vector<4x2x8xf32> to vector<1x4x2x8xf32>
    %33 = vector.shape_cast %27 : vector<4x2x8xf32> to vector<1x4x2x8xf32>
    %34 = vector.shape_cast %29 : vector<4x2x8xf32> to vector<1x4x2x8xf32>
    %35 = vector.shape_cast %31 : vector<4x2x8xf32> to vector<1x4x2x8xf32>
    %36 = tpu.concatenate %32, %33, %34, %35 in 0 : vector<1x4x2x8xf32>, vector<1x4x2x8xf32>, vector<1x4x2x8xf32>, vector<1x4x2x8xf32> -> vector<4x4x2x8xf32>
    %37 = vector.shape_cast %36 : vector<4x4x2x8xf32> to vector<16x2x8xf32>
    %38 = arith.truncf %37 : vector<16x2x8xf32> to vector<16x2x8xbf16>
    %39 = vector.extract_strided_slice %6 {offsets = [0, 64], sizes = [8, 8], strides = [1, 1]} : vector<8x96xf32> to vector<8x8xf32>
    %40 = vector.shape_cast %39 : vector<8x8xf32> to vector<4x2x8xf32>
    %41 = vector.extract_strided_slice %6 {offsets = [0, 72], sizes = [8, 8], strides = [1, 1]} : vector<8x96xf32> to vector<8x8xf32>
    %42 = vector.shape_cast %41 : vector<8x8xf32> to vector<4x2x8xf32>
    %43 = vector.extract_strided_slice %6 {offsets = [0, 80], sizes = [8, 8], strides = [1, 1]} : vector<8x96xf32> to vector<8x8xf32>
    %44 = vector.shape_cast %43 : vector<8x8xf32> to vector<4x2x8xf32>
    %45 = vector.extract_strided_slice %6 {offsets = [0, 88], sizes = [8, 8], strides = [1, 1]} : vector<8x96xf32> to vector<8x8xf32>
    %46 = vector.shape_cast %45 : vector<8x8xf32> to vector<4x2x8xf32>
    %47 = vector.shape_cast %40 : vector<4x2x8xf32> to vector<1x4x2x8xf32>
    %48 = vector.shape_cast %42 : vector<4x2x8xf32> to vector<1x4x2x8xf32>
    %49 = vector.shape_cast %44 : vector<4x2x8xf32> to vector<1x4x2x8xf32>
    %50 = vector.shape_cast %46 : vector<4x2x8xf32> to vector<1x4x2x8xf32>
    %51 = tpu.concatenate %47, %48, %49, %50 in 0 : vector<1x4x2x8xf32>, vector<1x4x2x8xf32>, vector<1x4x2x8xf32>, vector<1x4x2x8xf32> -> vector<4x4x2x8xf32>
    %52 = vector.shape_cast %51 : vector<4x4x2x8xf32> to vector<16x2x8xf32>
    %53 = arith.truncf %52 : vector<16x2x8xf32> to vector<16x2x8xbf16>
    "tpu.trace_start"() <{level = 10 : i32, message = "bnd,bmd->bnm"}> : () -> ()
    %cst_7 = arith.constant dense<0.000000e+00> : vector<16x2x2xf32>
    %54 = tpu.matmul %23, %38, %cst_7 {dimension_numbers = #tpu.dot_dimension_numbers<[2], [2], [1], [1], [0, 0, 0, 1, 1, 1], [0], [0]>} : vector<16x2x8xbf16>, vector<16x2x8xbf16>, vector<16x2x2xf32> -> vector<16x2x2xf32>
    "tpu.trace_stop"() : () -> ()
    %c0_8 = arith.constant 0 : index
    %c0_9 = arith.constant 0 : index
    %c0_10 = arith.constant 0 : index
    %c0_11 = arith.constant 0 : index
    %55 = vector.load %arg4[%c0_8, %c0_9, %c0_10, %c0_11] : memref<4x1x2x2xf32, #tpu.memory_space<vmem>>, vector<4x1x2x2xf32>
    %56 = vector.shape_cast %55 : vector<4x1x2x2xf32> to vector<4x2x2xf32>
    %57 = vector.shape_cast %56 : vector<4x2x2xf32> to vector<1x4x2x2xf32>
    %58 = vector.shape_cast %57 : vector<1x4x2x2xf32> to vector<1x4x2x2xf32>
    %59 = vector.broadcast %58 : vector<1x4x2x2xf32> to vector<4x4x2x2xf32>
    %60 = vector.shape_cast %59 : vector<4x4x2x2xf32> to vector<16x2x2xf32>
    %61 = arith.addf %54, %60 : vector<16x2x2xf32>
    %cst_12 = arith.constant dense<0xFF800000> : vector<16x2xf32>
    %62 = vector.multi_reduction <maximumf>, %61, %cst_12 [2] : vector<16x2x2xf32> to vector<16x2xf32>
    %63 = vector.shape_cast %62 : vector<16x2xf32> to vector<16x2x1xf32>
    %64 = vector.broadcast %63 : vector<16x2x1xf32> to vector<16x2x2xf32>
    %65 = arith.subf %61, %64 : vector<16x2x2xf32>
    %66 = math.exp %65 : vector<16x2x2xf32>
    %cst_13 = arith.constant dense<0.000000e+00> : vector<16x2xf32>
    %67 = vector.multi_reduction <add>, %66, %cst_13 [2] : vector<16x2x2xf32> to vector<16x2xf32>
    %68 = vector.shape_cast %67 : vector<16x2xf32> to vector<16x2x1xf32>
    %69 = tpu.reciprocal %68 {approx = true} : vector<16x2x1xf32> -> vector<16x2x1xf32>
    %70 = vector.broadcast %69 : vector<16x2x1xf32> to vector<16x2x2xf32>
    %71 = arith.mulf %66, %70 : vector<16x2x2xf32>
    %72 = arith.truncf %71 : vector<16x2x2xf32> to vector<16x2x2xbf16>
    "tpu.trace_start"() <{level = 10 : i32, message = "bnm,bmd->bnd"}> : () -> ()
    %cst_14 = arith.constant dense<0.000000e+00> : vector<16x2x8xf32>
    %73 = tpu.matmul %72, %53, %cst_14 {dimension_numbers = #tpu.dot_dimension_numbers<[2], [1], [1], [2], [0, 0, 0, 1, 1, 2], [0], [0]>} : vector<16x2x2xbf16>, vector<16x2x8xbf16>, vector<16x2x8xf32> -> vector<16x2x8xf32>
    "tpu.trace_stop"() : () -> ()
    %74 = vector.extract_strided_slice %73 {offsets = [0, 0, 0], sizes = [4, 2, 8], strides = [1, 1, 1]} : vector<16x2x8xf32> to vector<4x2x8xf32>
    %75 = vector.extract_strided_slice %73 {offsets = [4, 0, 0], sizes = [4, 2, 8], strides = [1, 1, 1]} : vector<16x2x8xf32> to vector<4x2x8xf32>
    %76 = vector.extract_strided_slice %73 {offsets = [8, 0, 0], sizes = [4, 2, 8], strides = [1, 1, 1]} : vector<16x2x8xf32> to vector<4x2x8xf32>
    %77 = vector.extract_strided_slice %73 {offsets = [12, 0, 0], sizes = [4, 2, 8], strides = [1, 1, 1]} : vector<16x2x8xf32> to vector<4x2x8xf32>
    %78 = tpu.concatenate %74, %75, %76, %77 in 2 : vector<4x2x8xf32>, vector<4x2x8xf32>, vector<4x2x8xf32>, vector<4x2x8xf32> -> vector<4x2x32xf32>
    %c0_15 = arith.constant 0 : index
    %c0_16 = arith.constant 0 : index
    %c0_17 = arith.constant 0 : index
    %79 = vector.load %arg5[%c0_15, %c0_16, %c0_17] : memref<4x2x32xf32, #tpu.memory_space<vmem>>, vector<4x2x32xf32>
    tpu.vector_store %arg5[%c0_15, %c0_16, %c0_17], %78 {strides = array<i32>} : memref<4x2x32xf32, #tpu.memory_space<vmem>>, vector<4x2x32xf32>,
    return
  }
  func.func @transform_0(%arg0: i32) -> (i32, i32, i32) {
    %c0_i32 = arith.constant 0 : i32
    %c0_i32_0 = arith.constant 0 : i32
    %c0_i32_1 = arith.constant 0 : i32
    return %arg0, %c0_i32, %c0_i32_0 : i32, i32, i32
  }
  func.func @transform_1(%arg0: i32) -> (i32, i32) {
    %c0_i32 = arith.constant 0 : i32
    %c0_i32_0 = arith.constant 0 : i32
    %c0_i32_1 = arith.constant 0 : i32
    return %c0_i32, %c0_i32_0 : i32, i32
  }
  func.func @transform_2(%arg0: i32) -> (i32, i32) {
    %c0_i32 = arith.constant 0 : i32
    %c0_i32_0 = arith.constant 0 : i32
    %c0_i32_1 = arith.constant 0 : i32
    return %c0_i32, %c0_i32_0 : i32, i32
  }
  func.func @transform_3(%arg0: i32) -> (i32, i32, i32, i32) {
    %c0_i32 = arith.constant 0 : i32
    %c0_i32_0 = arith.constant 0 : i32
    %c0_i32_1 = arith.constant 0 : i32
    %c0_i32_2 = arith.constant 0 : i32
    return %arg0, %c0_i32, %c0_i32_0, %c0_i32_1 : i32, i32, i32, i32
  }
  func.func @transform_4(%arg0: i32) -> (i32, i32, i32) {
    %c0_i32 = arith.constant 0 : i32
    %c0_i32_0 = arith.constant 0 : i32
    %c0_i32_1 = arith.constant 0 : i32
    return %arg0, %c0_i32, %c0_i32_0 : i32, i32, i32
  }
}

</mosaic_0001>

<bundles_post_ra>
// kernel: tpu_custom_call.1
= control target key start
LH: loop header
LB: loop body
LE: loop exit
PB: predicated region body
PF: predicated region fallthrough
CT: control target
= control target key end

     0   :  { %9 = vsyncpa [#allocation3], 0  ;;  %s2395_s0 = inlined_call_operand.hbm [shape: bf16[8,2,32], index: 0, kind: input, shape index: {}]   ;;  %s2396_s1 = inlined_call_operand.vmem [shape: bf16[32,96], index: 1, kind: input, shape index: {}]   ;;  %s2397_s2 = inlined_call_operand.vmem [shape: f32[1,96], index: 2, kind: input, shape index: {}]   ;;  %s2398_s3 = inlined_call_operand.vmem [shape: f32[8,1,2,2], index: 3, kind: input, shape index: {}]   ;;  %s2399_s4 = inlined_call_operand.hbm [shape: f32[8,2,32], index: 4, kind: output, shape index: {}]  }
   0x1   :  { %11 = vsyncpa [#allocation3 + $0x1], 0 }
   0x2   :  { %12 = vsyncpa [#allocation4], 0 }
   0x3   :  { %14 = vsyncpa [#allocation4 + $0x1], 0  ;;  %s1790_s15 = smov 0   ;;  %s1792_s16 = smov 0  }
   0x4   :  { %s1794_s17 = smov 0   ;;  %s1796_s18 = smov 0  }
   0x5 LB: > { %s1811_s19 = sadd.s32 4294967295, %s1751_s18   ;;  %s1473_s20 = sadd.s32 4294967294, %s1751_s18   ;;  %s1751_s18 = sphi %s1796_s18, %s2409_s18   ;;  %s1747_s17 = sphi %s1794_s17, %s2408_s17   ;;  %s1743_s16 = sphi %s1792_s16, %s2407_s16   ;;  %s1739_s15 = sphi %s1790_s15, %s2406_s15  }
   0x6   : > { %s1815_s21 = sadd.s32 1, %s1751_s18   ;;  %s27_s22 = sadd.s32 1, %s1747_s17 }
   0x7   : > { %s24_s23 = ssub.s32 %s1751_s18, %s1815_s21  ;;  %p34_p0 = scmp.ne.s32.totalorder %s1747_s17, %s1743_s16 }
   0x8   : > { %p25_p1 = scmp.eq.s32.totalorder %s24_s23, 0  ;;  %p35_p2 = scmp.eq.s32.totalorder %s1751_s18, 0 }
   0x9   : > { %p40_p3 = scmp.ne.s32.totalorder %s1743_s16, %s1739_s15  ;;  %p41_p4 = scmp.eq.s32.totalorder %s1811_s19, 0 }
   0xa   : > { %s1827_s24 = scalar_select %p25_p1, %s1747_s17, %s27_s22  }
   0xb   : > { %p1829_p5 = por %p35_p2, %p34_p0  ;;  %p1833_p6 = por %p41_p4, %p40_p3 }
   0xc   : > { %p132_p7 = scmp.eq.s32.totalorder %s1811_s19, 1  ;;  %p138_p8 = scmp.eq.s32.totalorder %s1473_s20, 1 }
   0xd   : > { %p1544_p10 = scmp.lt.s32.totalorder %s1751_s18, 2  ;;  %s164_s29 = sand.u32 1, %s1747_s17  }
   0xe   : > { %p1840_p11 = por %p132_p7, %p34_p0  ;;  %p1844_p12 = por %p138_p8, %p40_p3 }
   0xf   : > { %s1477_s30 = sshll.u32 %s1751_s18, 2  ;;  %s1476_s5 = sshll.u32 %s164_s29, 2 }
  0x10   : > { %s172_s8 = scalar_lea.hbm %s2395_s0, %s1477_s30  ;;  %s168_s10 = scalar_lea.vmem [#allocation2], %s1476_s5 }
  0x11   : > { %s173_s9 = sshll.u32 %s172_s8, 4  ;;  %s175_s11 = sshll.u32 %s168_s10, 4  ;;  %s174_s9 = int_to_ptr.hbm [resolvable:$true] %s173_s9  ;;  %s176_s11 = int_to_ptr.vmem [resolvable:$true] %s175_s11 }
  0x12   : > { %p1855_p13 = pnand %p1544_p10, %p1829_p5  ;;  %p1478_p0 = scmp.ge.s32.totalorder %s1751_s18, 1 }
  0x13   : > { %p192_p1 = scmp.lt.s32.totalorder %s1751_s18, 3  ;;  %s165_s13 = scalar_lea.sflag [#allocation3], %s164_s29 }
  0x14   : > { %s1655_s14 = sshra.s32 %s174_s9, 4  ;;  %p1659_p3 = pneg %p1855_p13  ;;  %s1656_s14 = int_to_ptr.hbm [resolvable:$true] %s1655_s14 }
  0x15   : > { %s1657_s20 = scalar_lea.hbm %s1656_s14, 4  ;;  %s1662_s25 = scalar_lea.hbm %s2395_s0, 8 }
  0x16   : > { %p1658_p2 = scmp.ne.s32.totalorder %s1656_s14, %s1657_s20  ;;  %p1663_p5 = scmp.lt.s32.totalorder %s1656_s14, %s2395_s0 }
  0x17   : > { %p1664_p8 = scmp.lt.s32.totalorder %s1662_s25, %s1657_s20 }
  0x18   : > { %p1660_p4 = pnand %p1659_p3, %p1658_p2 }
  0x19   : > { %p1665_p10 = por %p1664_p8, %p1663_p5 }
  0x1a   : > { %p1661_p7 = pneg %p1660_p4 }
  0x1c   : > { %p1666_p9 = pnand %p1665_p10, %p1661_p7 }
  0x1e   : > { %1669 = shalt.err (!%p1666_p9)
}
  0x1f   : > { %s1753_s29 = smov 16   ;;  %s1754_s6 = smov 1  }
  0x20   : > { %1539 = dma.hbm_to_vmem [thread:$0]  (!%p1855_p13), %s174_s9, 64, %s176_s11, %s165_s13, %s1753_s29, %s1753_s29, %s1754_s6  }
  0x21   : > { %p193_p2 = pnand %p1478_p0, %p192_p1 }
  0x22   : > { %s1876_s7 = sand.u32 (!%p193_p2), 1, %s1743_s16  }
  0x23   : > { %196 = sbr.rel (%p193_p2) target bundleno = 1142 (0x476), region = 36  ;;  %s1479_s8 = sshll.u32 (!%p193_p2), %s1876_s7, 2 }
  0x24   : > { %s199_s10 = scalar_lea.sflag (!%p193_p2), [#allocation3], %s1876_s7  ;;  %s202_s14 = scalar_lea.vmem (!%p193_p2), [#allocation2], %s1479_s8 }
  0x28   : > { %1730 = dma.done.wait (%p1833_p6), %s199_s10, 64  }
  0x29   : > { %1732 = vsyncadd (%p1833_p6), %s199_s10, 4294967232  ;;  %v1530_v0 = vld [vmem:[%s2396_s1 + $0x8] sm:$0xff]  ;;  %v1529_v2 = vld [vmem:[%s2396_s1] sm:$0xff]  ;;  %vm278_vm0 = vcmask 261120   ;;  %s1755_s22 = smov 120   ;;  %s1756_s23 = smov 112  }
  0x2a   : > { %v242_v1 = vld [vmem:[%s202_s14] sm:$0x1]  ;;  %v243_v3 = vld [vmem:[%s202_s14 + $0x1] sm:$0x1]  ;;  %v244_v4 = vld [vmem:[%s202_s14 + $0x2] sm:$0x1]  ;;  %287 = vmatpush.bf16.msra.mxu0 %v1530_v0 }
  0x2b   : > { %v245_v5 = vld [vmem:[%s202_s14 + $0x3] sm:$0x1]  ;;  %255 = vst [vmem:[#allocation1] ss:$9 sm:$0xff] %v242_v1  ;;  %v1590_v7 = vld [vmem:[%s2397_s2] ss:$0 sm:$0xff] }
  0x2c   : > { %258 = vst [vmem:[#allocation1 + $0x1] ss:$9 sm:$0xff] %v243_v3  ;;  %s1757_s25 = smov 104   ;;  %s1758_s30 = smov 96   ;;  %vm394_vm1 = vcmask 64512   ;;  %vm774_vm2 = vcmask 9216  }
  0x2d   : > { %261 = vst [vmem:[#allocation1 + $0x2] ss:$9 sm:$0xff] %v244_v4  ;;  %s1759_s5 = smov 64   ;;  %s1481_s29 = sshll.u32 %s1811_s19, 2  ;;  %vm973_vm3 = vcmask 1040384   ;;  %vm969_vm4 = vcmask 15360  }
  0x2e   : > { %264 = vst [vmem:[#allocation1 + $0x3] ss:$9 sm:$0xff] %v245_v5  ;;  %288 = vmatpush.bf16.msra.mxu0 %v1529_v2  ;;  %p235_p6 = scmp.lt.s32.totalorder %s1481_s29, 7  ;;  %s1760_s12 = smov 8   ;;  %vm1362_vm5 = vcmask 195584   ;;  %vm1357_vm6 = vcmask 130048  }
  0x2f   : > { %s1761_s9 = smov 16   ;;  %s1762_s11 = smov 24   ;;  %vm1367_vm7 = vcmask 254976  }
  0x30   : > { %s2411_s29 = smov (!%p235_p6, %s1481_s29), 7  ;;  %s1480_s13 = sshll.u32 %s1876_s7, 3 }
  0x31   : > { %s1482_s6 = sshll.u32 %s2411_s29, 1  ;;  %s232_s26 = scalar_lea.vmem [#allocation5], %s1480_s13 }
  0x32   : > { %s2068_s14 = scalar_lea.vmem %s2398_s3, %s1482_s6  ;;  %s1531_s20 = sshll.u32 %s1811_s19, 3 }
  0x33   : > { %s1373_s19 = scalar_lea.sflag [#allocation4], %s1876_s7 }
  0x35   : > { %v265_v6 = vld [vmem:[#allocation1] sm:$0xff] }
  0x36   : > { %1491 = vmatmul.msk.bf16.vlgmr.msra.gmra.mxu0 %vm278_vm0, %v265_v6 }
  0xb3   : > { %v290_v8 = vpop.f32.mrf.mxu0 }
  0xb4   : > { %v1893_v9 = vadd.f32 %v1590_v7, %v290_v8 }
  0xb6   : > { %301 = vrot.lane.b32.xlu1 %v1893_v9, %s1755_s22  ;;  %v295_v10 = vrot.slane %v1893_v9, 2  ;;  %v1898_v12 = vrot.slane %v1893_v9, 6  ;;  %v1902_v13 = vrot.slane %v1893_v9, 4  ;;  %v369_v21 = vpack.c.bf16 %v1893_v9, %v1893_v9 }
  0xb8   : > { %315 = vrot.lane.b32.xlu2 %v295_v10, %s1756_s23  ;;  %303 = vrot.lane.b32.xlu0 %v295_v10, %s1755_s22  ;;  %v371_v14 = vpack.c.bf16 %v1902_v13, %v1902_v13  ;;  %v370_v15 = vpack.c.bf16 %v295_v10, %v295_v10  ;;  %v372_v18 = vpack.c.bf16 %v1898_v12, %v1898_v12  ;;  %v390_v23 = vunpack.c.l.b16 %v369_v21 }
  0xb9   : > { %v338_v39 = vmul.f32 0.35355338, %v295_v10  ;;  %v339_v7 = vmul.f32 0.35355338, %v1902_v13 }
  0xba   : > { %v439_v16 = vunpack.c.l.b16 %v371_v14  ;;  %v415_v17 = vunpack.c.l.b16 %v370_v15  ;;  %v463_v22 = vunpack.c.l.b16 %v372_v18  ;;  %v1927_v25 = vpack.c.b16 %v390_v23, %v390_v23 }
  0xbb   : > { %v292_v11 = vpop.f32.mrf.mxu0  ;;  %v354_v45 = vpack.c.bf16 %v338_v39, %v338_v39  ;;  %v340_v18 = vmul.f32 0.35355338, %v1898_v12 }
  0xbc   : > { %v1913_v19 = vpack.c.b16 %v439_v16, %v439_v16  ;;  %v1915_v20 = vpack.c.b16 %v415_v17, %v415_v17  ;;  %v1923_v24 = vpack.c.b16 %v463_v22, %v463_v22  ;;  %v355_v16 = vpack.c.bf16 %v339_v7, %v339_v7 }
  0xbd   : > { %v337_v22 = vmul.f32 0.35355338, %v1893_v9  ;;  %v356_v23 = vpack.c.bf16 %v340_v18, %v340_v18 }
  0xbe   : > { %307 = vrot.lane.b32.xlu1 %v1898_v12, %s1755_s22 }
  0xc0   : > { %317 = vrot.lane.b32.xlu2 %v1902_v13, %s1756_s23  ;;  %305 = vrot.lane.b32.xlu0 %v1902_v13, %s1755_s22 }
  0xc6   : > { %319 = vrot.lane.b32.xlu1 %v1898_v12, %s1756_s23 }
  0xc8   : > { %329 = vrot.lane.b32.xlu2 %v1902_v13, %s1757_s25  ;;  %313 = vrot.lane.b32.xlu0 %v1893_v9, %s1756_s23 }
  0xce   : > { %327 = vrot.lane.b32.xlu1 %v295_v10, %s1757_s25 }
  0xd0   : > { %441 = vrot.lane.b32.xlu0 %v1913_v19, %s1758_s30  ;;  %417 = vrot.lane.b32.xlu2 %v1915_v20, %s1758_s30 }
  0xd6   : > { %465 = vrot.lane.b32.xlu1 %v1923_v24, %s1758_s30 }
  0xd8   : > { %392 = vrot.lane.b32.xlu0 %v1927_v25, %s1758_s30  ;;  %325 = vrot.lane.b32.xlu2 %v1893_v9, %s1757_s25 }
  0xe0   : > { %331 = vrot.lane.b32.xlu0 %v1898_v12, %s1757_s25  ;;  %s1384_s25 = scalar_lea.hbm %s2399_s4, %s1531_s20 }
 0x112   : > { %v1933_v26 = vpop.permute.xlu2 %315 }
 0x113   : > { %v378_v50 = vpack.c.bf16 %v1933_v26, %v1933_v26 }
 0x115   : > { %v607_v55 = vunpack.c.l.b16 %v378_v50 }
 0x117   : > { %v608_v58 = vpack.c.b16 %v607_v55, %v607_v55 }
 0x11a   : > { %v1935_v27 = vpop.permute.xlu2 %317 }
 0x11b   : > { %v379_v36 = vpack.c.bf16 %v1935_v27, %v1935_v27 }
 0x11d   : > { %v631_v42 = vunpack.c.l.b16 %v379_v36 }
 0x11f   : > { %v1967_v48 = vpack.c.b16 %v631_v42, %v631_v42 }
 0x122   : > { %v1937_v28 = vpop.permute.xlu2 %329 }
 0x123   : > { %v383_v59 = vpack.c.bf16 %v1937_v28, %v1937_v28 }
 0x125   : > { %v727_v1 = vunpack.c.l.b16 %v383_v59  ;;  %v346_v59 = vmul.f32 0.35355338, %v1933_v26 }
 0x127   : > { %v2000_v8 = vpack.c.b16 %v727_v1, %v727_v1 }
 0x128   : > { %v1939_v29 = vpop.permute.xlu1 %301 }
 0x129   : > { %v373_v30 = vpack.c.bf16 %v1939_v29, %v1939_v29  ;;  %v341_v39 = vmul.f32 0.35355338, %v1939_v29  ;;  %v347_v29 = vmul.f32 0.35355338, %v1935_v27 }
 0x12a   : > { %v1943_v31 = vpop.permute.xlu0 %303  ;;  %v418_v32 = vpop.permute.xlu2 %417 }
 0x12b   : > { %v487_v33 = vunpack.c.l.b16 %v373_v30  ;;  %v374_v34 = vpack.c.bf16 %v1943_v31, %v1943_v31  ;;  %v423_v35 = vsel %vm394_vm1, %v418_v32, 0  ;;  %v353_v32 = vpack.c.bf16 %v337_v22, %v337_v22 }
 0x12c   : > { %432 = vmatpush.bf16.xpose.msra.mxu2 %v423_v35  ;;  %v363_v55 = vpack.c.bf16 %v347_v29, %v347_v29 }
 0x12d   : > { %v1950_v37 = vpack.c.b16 %v487_v33, %v487_v33  ;;  %v511_v38 = vunpack.c.l.b16 %v374_v34 }
 0x12f   : > { %v1952_v40 = vpack.c.b16 %v511_v38, %v511_v38  ;;  %489 = vrot.lane.b32.xlu0 %v1950_v37, %s1758_s30 }
 0x130   : > { %v1956_v41 = vpop.permute.xlu1 %307 }
 0x131   : > { %v376_v43 = vpack.c.bf16 %v1956_v41, %v1956_v41  ;;  %513 = vrot.lane.b32.xlu1 %v1952_v40, %s1758_s30 }
 0x132   : > { %v1962_v44 = vpop.permute.xlu0 %305  ;;  %v1995_v5 = vpop.permute.xlu2 %325 }
 0x133   : > { %v559_v46 = vunpack.c.l.b16 %v376_v43  ;;  %v375_v47 = vpack.c.bf16 %v1962_v44, %v1962_v44  ;;  %1493 = vmatmul.msk.bf16.vlgmr.msra.gmra.mxu2 %vm394_vm1, %v354_v45  ;;  %v381_v11 = vpack.c.bf16 %v1995_v5, %v1995_v5  ;;  %v357_v45 = vpack.c.bf16 %v341_v39, %v341_v39 }
 0x135   : > { %v535_v49 = vunpack.c.l.b16 %v375_v47  ;;  %v1971_v51 = vpack.c.b16 %v559_v46, %v559_v46  ;;  %v679_v21 = vunpack.c.l.b16 %v381_v11  ;;  %v351_v11 = vmul.f32 0.35355338, %v1937_v28 }
 0x137   : > { %v536_v52 = vpack.c.b16 %v535_v49, %v535_v49  ;;  %633 = vrot.lane.b32.xlu0 %v1967_v48, %s1758_s30  ;;  %v2014_v30 = vpack.c.b16 %v679_v21, %v679_v21  ;;  %v349_v21 = vmul.f32 0.35355338, %v1995_v5 }
 0x138   : > { %v1975_v53 = vpop.permute.xlu1 %319 }
 0x139   : > { %561 = vrot.lane.b32.xlu1 %v1971_v51, %s1758_s30  ;;  %537 = vrot.lane.b32.xlu2 %v536_v52, %s1758_s30  ;;  %v380_v60 = vpack.c.bf16 %v1975_v53, %v1975_v53 }
 0x13a   : > { %v1980_v54 = vpop.permute.xlu0 %313 }
 0x13b   : > { %v377_v56 = vpack.c.bf16 %v1980_v54, %v1980_v54  ;;  %v655_v2 = vunpack.c.l.b16 %v380_v60  ;;  %v345_v60 = vmul.f32 0.35355338, %v1980_v54 }
 0x13d   : > { %v583_v57 = vunpack.c.l.b16 %v377_v56  ;;  %v656_v10 = vpack.c.b16 %v655_v2, %v655_v2  ;;  %v362_v2 = vpack.c.bf16 %v346_v59, %v346_v59 }
 0x13f   : > { %v584_v61 = vpack.c.b16 %v583_v57, %v583_v57 }
 0x140   : > { %v1988_v62 = vpop.permute.xlu1 %327 }
 0x141   : > { %v382_v63 = vpack.c.bf16 %v1988_v62, %v1988_v62  ;;  %585 = vrot.lane.b32.xlu1 %v584_v61, %s1758_s30  ;;  %609 = vrot.lane.b32.xlu2 %v608_v58, %s1758_s30  ;;  %v350_v22 = vmul.f32 0.35355338, %v1988_v62 }
 0x142   : > { %v442_v0 = vpop.permute.xlu0 %441 }
 0x143   : > { %v703_v3 = vunpack.c.l.b16 %v382_v63  ;;  %v447_v4 = vsel %vm394_vm1, %v442_v0, 0 }
 0x144   : > { %456 = vmatpush.bf16.xpose.msra.mxu3 %v447_v4 }
 0x145   : > { %v1997_v6 = vpack.c.b16 %v703_v3, %v703_v3  ;;  %v361_v3 = vpack.c.bf16 %v345_v60, %v345_v60 }
 0x147   : > { %705 = vrot.lane.b32.xlu0 %v1997_v6, %s1758_s30 }
 0x148   : > { %v466_v14 = vpop.permute.xlu1 %465 }
 0x149   : > { %729 = vrot.lane.b32.xlu1 %v2000_v8, %s1758_s30  ;;  %657 = vrot.lane.b32.xlu2 %v656_v10, %s1758_s30  ;;  %v471_v15 = vsel %vm394_vm1, %v466_v14, 0  ;;  %v348_v14 = vmul.f32 0.35355338, %v1975_v53  ;;  %v366_v53 = vpack.c.bf16 %v350_v22, %v350_v22 }
 0x14a   : > { %480 = vmatpush.bf16.xpose.msrb.mxu0 %v471_v15  ;;  %v393_v13 = vpop.permute.xlu0 %392 }
 0x14b   : > { %1494 = vmatmul.msk.bf16.vlgmr.msra.gmra.mxu3 %vm394_vm1, %v355_v16  ;;  %v399_v17 = vsel %vm394_vm1, %v393_v13, 0  ;;  %v367_v16 = vpack.c.bf16 %v351_v11, %v351_v11  ;;  %v364_v13 = vpack.c.bf16 %v348_v14, %v348_v14 }
 0x14c   : > { %408 = vmatpush.bf16.xpose.msra.mxu1 %v399_v17 }
 0x151   : > { %1495 = vmatmul.msk.bf16.vlgmr.msrb.gmra.mxu0 %vm394_vm1, %v356_v23  ;;  %967 = vrot.lane.b32.xlu1 %v1927_v25, %s1759_s5  ;;  %v343_v25 = vmul.f32 0.35355338, %v1962_v44  ;;  %v342_v44 = vmul.f32 0.35355338, %v1943_v31  ;;  %v365_v23 = vpack.c.bf16 %v349_v21, %v349_v21 }
 0x152   : > { %681 = vrot.lane.b32.xlu2 %v2014_v30, %s1758_s30  ;;  %v2021_v33 = vpop.permute.xlu0 %331 }
 0x153   : > { %v384_v12 = vpack.c.bf16 %v2021_v33, %v2021_v33  ;;  %1492 = vmatmul.msk.bf16.vlgmr.msra.gmra.mxu1 %vm394_vm1, %v353_v32  ;;  %v358_v47 = vpack.c.bf16 %v342_v44, %v342_v44  ;;  %v352_v62 = vmul.f32 0.35355338, %v2021_v33 }
 0x155   : > { %v751_v9 = vunpack.c.l.b16 %v384_v12  ;;  %v368_v39 = vpack.c.bf16 %v352_v62, %v352_v62 }
 0x157   : > { %v2026_v34 = vpack.c.b16 %v751_v9, %v751_v9 }
 0x159   : > { %1137 = vrot.lane.b32.xlu1 %v584_v61, %s1759_s5  ;;  %753 = vrot.lane.b32.xlu0 %v2026_v34, %s1758_s30  ;;  %s1385_s30 = sshll.u32 %s232_s26, 4  ;;  %s1386_s30 = int_to_ptr.vmem [resolvable:$true] %s1385_s30 }
 0x15a   : > { %990 = vrot.lane.b32.xlu2 %v1915_v20, %s1759_s5 }
 0x161   : > { %1074 = vrot.lane.b32.xlu1 %v1952_v40, %s1759_s5  ;;  %1011 = vrot.lane.b32.xlu0 %v1913_v19, %s1759_s5 }
 0x162   : > { %1053 = vrot.lane.b32.xlu2 %v1950_v37, %s1759_s5 }
 0x169   : > { %1032 = vrot.lane.b32.xlu0 %v1923_v24, %s1759_s5  ;;  %v359_v24 = vpack.c.bf16 %v343_v25, %v343_v25 }
 0x16a   : > { %1158 = vrot.lane.b32.xlu2 %v608_v58, %s1759_s5  ;;  %v2074_v58 = vld [vmem:[%s2068_s14 + $0x2] sm:$0x3] }
 0x171   : > { %1095 = vrot.lane.b32.xlu0 %v536_v52, %s1759_s5 }
 0x179   : > { %1116 = vrot.lane.b32.xlu0 %v1971_v51, %s1759_s5  ;;  %v344_v51 = vmul.f32 0.35355338, %v1956_v41 }
 0x17b   : > { %v360_v56 = vpack.c.bf16 %v344_v51, %v344_v51 }
 0x181   : > { %1179 = vrot.lane.b32.xlu0 %v1967_v48, %s1759_s5 }
 0x189   : > { %1200 = vrot.lane.b32.xlu0 %v656_v10, %s1759_s5 }
 0x193   : > { %v538_v19 = vpop.permute.xlu2 %537 }
 0x194   : > { %v543_v20 = vsel %vm394_vm1, %v538_v19, 0 }
 0x195   : > { %552 = vmatpush.bf16.xpose.msrb.mxu3 %v543_v20  ;;  %v2102_v20 = vld [vmem:[%s2068_s14 + $0x6] sm:$0x3] }
 0x19b   : > { %v610_v35 = vpop.permute.xlu2 %609 }
 0x19c   : > { %1498 = vmatmul.msk.bf16.vlgmr.msrb.gmra.mxu3 %vm394_vm1, %v359_v24  ;;  %v615_v42 = vsel %vm394_vm1, %v610_v35, 0  ;;  %v2106_v24 = vld [vmem:[%s2068_s14] sm:$0x3] }
 0x1a1   : > { %v490_v36 = vpop.permute.xlu0 %489 }
 0x1a2   : > { %v495_v37 = vsel %vm394_vm1, %v490_v36, 0 }
 0x1a3   : > { %v514_v38 = vpop.permute.xlu1 %513  ;;  %504 = vmatpush.bf16.xpose.msrb.mxu1 %v495_v37  ;;  %v658_v43 = vpop.permute.xlu2 %657 }
 0x1a4   : > { %v519_v40 = vsel %vm394_vm1, %v514_v38, 0  ;;  %v663_v31 = vsel %vm394_vm1, %v658_v43, 0 }
 0x1a5   : > { %528 = vmatpush.bf16.xpose.msrb.mxu2 %v519_v40  ;;  %v2117_v40 = vld [vmem:[%s2068_s14 + $0x4] sm:$0x3]  ;;  %s1705_s14 = scalar_lea.hbm %s2399_s4, 16 }
 0x1a9   : > { %v634_v46 = vpop.permute.xlu0 %633 }
 0x1aa   : > { %v639_v48 = vsel %vm394_vm1, %v634_v46, 0  ;;  %1496 = vmatmul.msk.bf16.vlgmr.msrb.gmra.mxu1 %vm394_vm1, %v357_v45 }
 0x1ab   : > { %v562_v49 = vpop.permute.xlu1 %561  ;;  %648 = vmatpush.bf16.xpose.msra.mxu3 %v639_v48 }
 0x1ac   : > { %v567_v50 = vsel %vm394_vm1, %v562_v49, 0  ;;  %1497 = vmatmul.msk.bf16.vlgmr.msrb.gmra.mxu2 %vm394_vm1, %v358_v47  ;;  %v682_v52 = vpop.permute.xlu2 %681 }
 0x1ad   : > { %624 = vmatpush.bf16.xpose.msra.mxu2 %v615_v42  ;;  %576 = vmatpush.bf16.xpose.msra.mxu0 %v567_v50  ;;  %v687_v41 = vsel %vm394_vm1, %v682_v52, 0 }
 0x1b2   : > { %1502 = vmatmul.msk.bf16.vlgmr.msra.gmra.mxu3 %vm394_vm1, %v363_v55 }
 0x1b3   : > { %v586_v27 = vpop.permute.xlu1 %585 }
 0x1b4   : > { %v591_v57 = vsel %vm394_vm1, %v586_v27, 0  ;;  %1499 = vmatmul.msk.bf16.vlgmr.msra.gmra.mxu0 %vm394_vm1, %v360_v56  ;;  %v991_v0 = vpop.permute.xlu2 %990 }
 0x1b5   : > { %672 = vmatpush.bf16.xpose.msrb.mxu0 %v663_v31  ;;  %600 = vmatpush.bf16.xpose.msra.mxu1 %v591_v57  ;;  %v996_v54 = vsel %vm973_vm3, %v991_v0, 0 }
 0x1b6   : > { %v434_v61 = vpop.f32.mrf.mxu2 }
 0x1b7   : > { %v2079_v63 = vadd.f32 %v434_v61, %v2074_v58 }
 0x1b9   : > { %v706_v1 = vpop.permute.xlu0 %705  ;;  %v778_v7 = vsel %vm774_vm2, %v2079_v63, -inf }
 0x1ba   : > { %v711_v4 = vsel %vm394_vm1, %v706_v1, 0  ;;  %779 = vmax.xlane.f32.xlu1 %v778_v7 }
 0x1bb   : > { %v730_v26 = vpop.permute.xlu1 %729  ;;  %720 = vmatpush.bf16.xpose.msrb.mxu2 %v711_v4 }
 0x1bc   : > { %v735_v10 = vsel %vm394_vm1, %v730_v26, 0  ;;  %1500 = vmatmul.msk.bf16.vlgmr.msra.gmra.mxu1 %vm394_vm1, %v361_v3  ;;  %1501 = vmatmul.msk.bf16.vlgmr.msra.gmra.mxu2 %vm394_vm1, %v362_v2  ;;  %v1054_v28 = vpop.permute.xlu2 %1053 }
 0x1bd   : > { %696 = vmatpush.bf16.xpose.msrb.mxu1 %v687_v41  ;;  %744 = vmatpush.bf16.xpose.msrb.mxu3 %v735_v10  ;;  %v1059_v9 = vsel %vm973_vm3, %v1054_v28, 0 }
 0x1be   : > { %v436_v15 = vpop.f32.mrf.mxu2 }
 0x1c3   : > { %1005 = vmatpush.bf16.msra.mxu2 %v996_v54  ;;  %v968_v17 = vpop.permute.xlu1 %967 }
 0x1c4   : > { %v975_v18 = vsel %vm973_vm3, %v968_v17, 0  ;;  %1503 = vmatmul.msk.bf16.vlgmr.msrb.gmra.mxu0 %vm394_vm1, %v364_v13  ;;  %1506 = vmatmul.msk.bf16.vlgmr.msrb.gmra.mxu3 %vm394_vm1, %v367_v16 }
 0x1c5   : > { %984 = vmatpush.bf16.msra.mxu1 %v975_v18  ;;  %v2157_v18 = vpop.permute.xlu2 %1158 }
 0x1cb   : > { %v2095_v32 = vpop.permute.xlu1 %1137  ;;  %v754_v12 = vpop.permute.xlu0 %753 }
 0x1cc   : > { %v759_v19 = vsel %vm394_vm1, %v754_v12, 0  ;;  %1504 = vmatmul.msk.bf16.vlgmr.msrb.gmra.mxu1 %vm394_vm1, %v365_v23  ;;  %1505 = vmatmul.msk.bf16.vlgmr.msrb.gmra.mxu2 %vm394_vm1, %v366_v53 }
 0x1cd   : > { %1068 = vmatpush.bf16.msrb.mxu1 %v1059_v9  ;;  %768 = vmatpush.bf16.xpose.msra.mxu0 %v759_v19 }
 0x1ce   : > { %v458_v5 = vpop.f32.mrf.mxu3  ;;  %v482_v25 = vpop.f32.mrf.mxu0 }
 0x1cf   : > { %v2109_v35 = vadd.f32 %v482_v25, %v2102_v20  ;;  %v2125_v46 = vadd.f32 %v458_v5, %v2117_v40 }
 0x1d0   : > { %v410_v36 = vpop.f32.mrf.mxu1 }
 0x1d1   : > { %v2112_v37 = vadd.f32 %v410_v36, %v2106_v24  ;;  %v784_v38 = vsel %vm774_vm2, %v2109_v35, -inf  ;;  %v781_v29 = vsel %vm774_vm2, %v2125_v46, -inf }
 0x1d2   : > { %785 = vmax.xlane.f32.xlu2 %v784_v38 }
 0x1d3   : > { %v1075_v42 = vpop.permute.xlu1 %1074  ;;  %v1012_v33 = vpop.permute.xlu0 %1011  ;;  %v775_v43 = vsel %vm774_vm2, %v2112_v37, -inf }
 0x1d4   : > { %v1080_v44 = vsel %vm973_vm3, %v1075_v42, 0  ;;  %v1017_v45 = vsel %vm973_vm3, %v1012_v33, 0  ;;  %776 = vmax.xlane.f32.xlu0 %v775_v43  ;;  %1507 = vmatmul.msk.bf16.vlgmr.msra.gmra.mxu0 %vm394_vm1, %v368_v39 }
 0x1d5   : > { %1026 = vmatpush.bf16.msra.mxu3 %v1017_v45  ;;  %1089 = vmatpush.bf16.msrb.mxu2 %v1080_v44 }
 0x1d6   : > { %v460_v47 = vpop.f32.mrf.mxu3  ;;  %v484_v48 = vpop.f32.mrf.mxu0 }
 0x1d8   : > { %v412_v49 = vpop.f32.mrf.mxu1 }
 0x1da   : > { %782 = vmax.xlane.f32.xlu2 %v781_v29 }
 0x1db   : > { %v1033_v50 = vpop.permute.xlu0 %1032 }
 0x1dc   : > { %v1038_v31 = vsel %vm973_vm3, %v1033_v50, 0 }
 0x1dd   : > { %1047 = vmatpush.bf16.msrb.mxu0 %v1038_v31 }
 0x1e3   : > { %v1096_v51 = vpop.permute.xlu0 %1095 }
 0x1e4   : > { %v1101_v52 = vsel %vm973_vm3, %v1096_v51, 0 }
 0x1e5   : > { %1110 = vmatpush.bf16.msrb.mxu3 %v1101_v52 }
 0x1eb   : > { %v1117_v55 = vpop.permute.xlu0 %1116 }
 0x1ec   : > { %v1122_v56 = vsel %vm973_vm3, %v1117_v55, 0 }
 0x1ed   : > { %1131 = vmatpush.bf16.msra.mxu0 %v1122_v56 }
 0x1f3   : > { %v2147_v26 = vpop.permute.xlu0 %1179 }
 0x1fb   : > { %v2159_v22 = vpop.permute.xlu0 %1200 }
 0x21f   : > { %v554_v27 = vpop.f32.mrf.mxu3 }
 0x220   : > { %v2133_v57 = vadd.f32 %v554_v27, %v2117_v40 }
 0x222   : > { %v793_v41 = vsel %vm774_vm2, %v2133_v57, -inf }
 0x223   : > { %794 = vmax.xlane.f32.xlu2 %v793_v41 }
 0x227   : > { %v506_v59 = vpop.f32.mrf.mxu1  ;;  %v556_v60 = vpop.f32.mrf.mxu3 }
 0x228   : > { %v2138_v61 = vadd.f32 %v506_v59, %v2106_v24 }
 0x22a   : > { %v787_v0 = vsel %vm774_vm2, %v2138_v61, -inf }
 0x22b   : > { %788 = vmax.xlane.f32.xlu0 %v787_v0 }
 0x22d   : > { %v780_v11 = vpop.xlane.xlu1 %779 }
 0x22e   : > { %v824_v13 = vsub.f32 %v2079_v63, %v780_v11 }
 0x22f   : > { %v508_v1 = vpop.f32.mrf.mxu1  ;;  %v530_v2 = vpop.f32.mrf.mxu2 }
 0x230   : > { %v2152_v14 = vadd.f32 %v530_v2, %v2074_v58  ;;  %v841_v28 = vmul.f32 1.442695, %v824_v13 }
 0x231   : > { %v578_v3 = vpop.f32.mrf.mxu0 }
 0x232   : > { %v2143_v4 = vadd.f32 %v578_v3, %v2102_v20  ;;  %v790_v17 = vsel %vm774_vm2, %v2152_v14, -inf  ;;  %1591 = vpow2.f32 %v841_v28 }
 0x234   : > { %v796_v7 = vsel %vm774_vm2, %v2143_v4, -inf }
 0x235   : > { %v2149_v54 = vpop.f32.mrf.mxu3  ;;  %797 = vmax.xlane.f32.xlu1 %v796_v7 }
 0x237   : > { %v532_v10 = vpop.f32.mrf.mxu2 }
 0x238   : > { %v2168_v42 = vpop.eup %1591 }
 0x239   : > { %v580_v15 = vpop.f32.mrf.mxu0  ;;  %v602_v16 = vpop.f32.mrf.mxu1  ;;  %v874_v45 = vsel %vm774_vm2, %v2168_v42, 0.0 }
 0x23a   : > { %v2187_v27 = vadd.f32 %v602_v16, %v2106_v24 }
 0x23c   : > { %v799_v1 = vsel %vm774_vm2, %v2187_v27, -inf }
 0x23d   : > { %v652_v21 = vpop.f32.mrf.mxu3  ;;  %791 = vmax.xlane.f32.xlu1 %v790_v17 }
 0x23f   : > { %v626_v23 = vpop.f32.mrf.mxu2 }
 0x241   : > { %v604_v53 = vpop.f32.mrf.mxu1  ;;  %v674_v12 = vpop.f32.mrf.mxu0 }
 0x242   : > { %v2162_v9 = vadd.f32 %v674_v12, %v2102_v20 }
 0x244   : > { %v808_v63 = vsel %vm774_vm2, %v2162_v9, -inf }
 0x245   : > { %809 = vmax.xlane.f32.xlu2 %v808_v63  ;;  %v786_v19 = vpop.xlane.xlu2 %785 }
 0x246   : > { %v826_v62 = vsub.f32 %v2109_v35, %v786_v19 }
 0x247   : > { %v777_v5 = vpop.xlane.xlu0 %776  ;;  %v628_v25 = vpop.f32.mrf.mxu2 }
 0x248   : > { %v845_v36 = vmul.f32 1.442695, %v826_v62  ;;  %v823_v38 = vsub.f32 %v2112_v37, %v777_v5  ;;  %v746_v39 = vpop.f32.mrf.mxu3  ;;  %v2176_v37 = vadd.f32 %v626_v23, %v2074_v58 }
 0x249   : > { %v676_v33 = vpop.f32.mrf.mxu0  ;;  %v698_v43 = vpop.f32.mrf.mxu1  ;;  %v2212_v15 = vadd.f32 %v746_v39, %v2117_v40 }
 0x24a   : > { %1593 = vpow2.f32 %v845_v36  ;;  %v839_v44 = vmul.f32 1.442695, %v823_v38  ;;  %v802_v56 = vsel %vm774_vm2, %v2176_v37, -inf  ;;  %v2201_v7 = vadd.f32 %v698_v43, %v2106_v24 }
 0x24b   : > { %v817_v24 = vsel %vm774_vm2, %v2212_v15, -inf }
 0x24c   : > { %1595 = vpow2.f32 %v839_v44  ;;  %v811_v10 = vsel %vm774_vm2, %v2201_v7, -inf }
 0x24d   : > { %v783_v47 = vpop.xlane.xlu2 %782  ;;  %875 = vadd.xlane.f32.xlu2 %v874_v45 }
 0x24e   : > { %v825_v35 = vsub.f32 %v2125_v46, %v783_v47 }
 0x24f   : > { %v722_v48 = vpop.f32.mrf.mxu2 }
 0x250   : > { %v2173_v49 = vpop.eup %1593  ;;  %v843_v29 = vmul.f32 1.442695, %v825_v35  ;;  %v748_v50 = vpop.f32.mrf.mxu3  ;;  %v2215_v16 = vadd.f32 %v722_v48, %v2074_v58 }
 0x251   : > { %v700_v31 = vpop.f32.mrf.mxu1  ;;  %v770_v51 = vpop.f32.mrf.mxu0  ;;  %v880_v52 = vsel %vm774_vm2, %v2173_v49, 0.0 }
 0x252   : > { %v2180_v55 = vpop.eup %1595  ;;  %1597 = vpow2.f32 %v843_v29  ;;  %881 = vadd.xlane.f32.xlu1 %v880_v52  ;;  %v2192_v60 = vadd.f32 %v770_v51, %v2102_v20  ;;  %v2205_v20 = vadd.f32 %v2149_v54, %v2117_v40  ;;  %v814_v54 = vsel %vm774_vm2, %v2215_v16, -inf }
 0x253   : > { %v871_v46 = vsel %vm774_vm2, %v2180_v55, 0.0 }
 0x254   : > { %872 = vadd.xlane.f32.xlu0 %v871_v46  ;;  %v820_v3 = vsel %vm774_vm2, %v2192_v60, -inf  ;;  %v805_v11 = vsel %vm774_vm2, %v2205_v20, -inf }
 0x255   : > { %803 = vmax.xlane.f32.xlu2 %v802_v56  ;;  %v1164_v56 = vsel %vm973_vm3, %v2157_v18, 0 }
 0x257   : > { %v724_v41 = vpop.f32.mrf.mxu2 }
 0x258   : > { %v2189_v59 = vpop.eup %1597 }
 0x259   : > { %v772_v0 = vpop.f32.mrf.mxu0  ;;  %v877_v2 = vsel %vm774_vm2, %v2189_v59, 0.0 }
 0x25a   : > { %800 = vmax.xlane.f32.xlu1 %v799_v1 }
 0x25c   : > { %878 = vadd.xlane.f32.xlu0 %v877_v2 }
 0x25d   : > { %821 = vmax.xlane.f32.xlu2 %v820_v3 }
 0x262   : > { %812 = vmax.xlane.f32.xlu1 %v811_v10 }
 0x264   : > { %806 = vmax.xlane.f32.xlu0 %v805_v11  ;;  %v1206_v11 = vsel %vm973_vm3, %v2159_v22, 0 }
 0x26a   : > { %818 = vmax.xlane.f32.xlu1 %v817_v24  ;;  %v1143_v24 = vsel %vm973_vm3, %v2095_v32, 0 }
 0x26c   : > { %815 = vmax.xlane.f32.xlu0 %v814_v54 }
 0x296   : > { %v795_v13 = vpop.xlane.xlu2 %794 }
 0x297   : > { %v829_v17 = vsub.f32 %v2133_v57, %v795_v13 }
 0x299   : > { %v851_v21 = vmul.f32 1.442695, %v829_v17 }
 0x29b   : > { %1599 = vpow2.f32 %v851_v21 }
 0x29e   : > { %v789_v28 = vpop.xlane.xlu0 %788 }
 0x29f   : > { %v827_v40 = vsub.f32 %v2138_v61, %v789_v28 }
 0x2a1   : > { %v2223_v23 = vpop.eup %1599  ;;  %v847_v58 = vmul.f32 1.442695, %v827_v40 }
 0x2a2   : > { %v889_v53 = vsel %vm774_vm2, %v2223_v23, 0.0 }
 0x2a3   : > { %1601 = vpow2.f32 %v847_v58  ;;  %890 = vadd.xlane.f32.xlu1 %v889_v53 }
 0x2a8   : > { %v798_v12 = vpop.xlane.xlu1 %797 }
 0x2a9   : > { %v2227_v63 = vpop.eup %1601  ;;  %v830_v19 = vsub.f32 %v2143_v4, %v798_v12 }
 0x2aa   : > { %v883_v57 = vsel %vm774_vm2, %v2227_v63, 0.0 }
 0x2ab   : > { %v853_v62 = vmul.f32 1.442695, %v830_v19  ;;  %884 = vadd.xlane.f32.xlu0 %v883_v57 }
 0x2ad   : > { %1603 = vpow2.f32 %v853_v62 }
 0x2b0   : > { %v792_v61 = vpop.xlane.xlu1 %791 }
 0x2b1   : > { %v828_v5 = vsub.f32 %v2152_v14, %v792_v61 }
 0x2b3   : > { %v2233_v25 = vpop.eup %1603  ;;  %v849_v36 = vmul.f32 1.442695, %v828_v5 }
 0x2b4   : > { %v892_v38 = vsel %vm774_vm2, %v2233_v25, 0.0 }
 0x2b5   : > { %1605 = vpow2.f32 %v849_v36  ;;  %893 = vadd.xlane.f32.xlu2 %v892_v38 }
 0x2b8   : > { %v810_v39 = vpop.xlane.xlu2 %809 }
 0x2b9   : > { %v834_v4 = vsub.f32 %v2162_v9, %v810_v39 }
 0x2bb   : > { %v2238_v33 = vpop.eup %1605  ;;  %v861_v43 = vmul.f32 1.442695, %v834_v4 }
 0x2bc   : > { %v886_v44 = vsel %vm774_vm2, %v2238_v33, 0.0 }
 0x2bd   : > { %1607 = vpow2.f32 %v861_v43  ;;  %887 = vadd.xlane.f32.xlu2 %v886_v44 }
 0x2c0   : > { %v876_v14 = vpop.xlane.xlu2 %875 }
 0x2c1   : > { %1609 = vrcp.f32 %v876_v14 }
 0x2c3   : > { %v2242_v45 = vpop.eup %1607 }
 0x2c4   : > { %v904_v47 = vsel %vm774_vm2, %v2242_v45, 0.0 }
 0x2c5   : > { %905 = vadd.xlane.f32.xlu1 %v904_v47  ;;  %v882_v35 = vpop.xlane.xlu1 %881 }
 0x2c6   : > { %1611 = vrcp.f32 %v882_v35 }
 0x2c7   : > { %v1610_v48 = vpop.eup %1609  ;;  %v873_v9 = vpop.xlane.xlu0 %872 }
 0x2c8   : > { %v936_v29 = vmul.f32 %v1610_v48, %v2168_v42  ;;  %1613 = vrcp.f32 %v873_v9  ;;  %v804_v50 = vpop.xlane.xlu2 %803 }
 0x2c9   : > { %v832_v31 = vsub.f32 %v2176_v37, %v804_v50 }
 0x2ca   : > { %v952_v51 = vpack.c.bf16 %v936_v29, %v936_v29 }
 0x2cb   : > { %v857_v52 = vmul.f32 1.442695, %v832_v31 }
 0x2cc   : > { %v1612_v46 = vpop.eup %1611  ;;  %1509 = vmatmul.msk.bf16.vlgmr.msra.gmra.mxu2 %vm969_vm4, %v952_v51 }
 0x2cd   : > { %v938_v41 = vmul.f32 %v1612_v46, %v2173_v49  ;;  %1615 = vpow2.f32 %v857_v52  ;;  %1173 = vmatpush.bf16.msra.mxu2 %v1164_v56  ;;  %v801_v0 = vpop.xlane.xlu1 %800 }
 0x2ce   : > { %v1614_v1 = vpop.eup %1613  ;;  %v831_v42 = vsub.f32 %v2187_v27, %v801_v0 }
 0x2cf   : > { %v954_v2 = vpack.c.bf16 %v938_v41, %v938_v41  ;;  %v935_v37 = vmul.f32 %v1614_v1, %v2180_v55  ;;  %v879_v3 = vpop.xlane.xlu0 %878 }
 0x2d0   : > { %v855_v10 = vmul.f32 1.442695, %v831_v42  ;;  %1617 = vrcp.f32 %v879_v3  ;;  %v822_v22 = vpop.xlane.xlu2 %821 }
 0x2d1   : > { %v951_v18 = vpack.c.bf16 %v935_v37, %v935_v37  ;;  %1511 = vmatmul.msk.bf16.vlgmr.msrb.gmra.mxu0 %vm969_vm4, %v954_v2  ;;  %v838_v53 = vsub.f32 %v2192_v60, %v822_v22 }
 0x2d2   : > { %1619 = vpow2.f32 %v855_v10  ;;  %1215 = vmatpush.bf16.msrb.mxu0 %v1206_v11 }
 0x2d3   : > { %v2257_v49 = vpop.eup %1615  ;;  %1508 = vmatmul.msk.bf16.vlgmr.msra.gmra.mxu1 %vm969_vm4, %v951_v18 }
 0x2d4   : > { %1152 = vmatpush.bf16.msra.mxu1 %v1143_v24  ;;  %v898_v55 = vsel %vm774_vm2, %v2257_v49, 0.0 }
 0x2d5   : > { %899 = vadd.xlane.f32.xlu1 %v898_v55  ;;  %v813_v27 = vpop.xlane.xlu1 %812 }
 0x2d6   : > { %v1618_v54 = vpop.eup %1617  ;;  %v835_v13 = vsub.f32 %v2201_v7, %v813_v27  ;;  %v1185_v7 = vsel %vm973_vm3, %v2147_v26, 0 }
 0x2d7   : > { %v937_v17 = vmul.f32 %v1618_v54, %v2189_v59  ;;  %v807_v21 = vpop.xlane.xlu0 %806  ;;  %v869_v59 = vmul.f32 1.442695, %v838_v53 }
 0x2d8   : > { %v2266_v28 = vpop.eup %1619  ;;  %v863_v40 = vmul.f32 1.442695, %v835_v13  ;;  %v833_v32 = vsub.f32 %v2205_v20, %v807_v21 }
 0x2d9   : > { %v953_v58 = vpack.c.bf16 %v937_v17, %v937_v17  ;;  %v895_v12 = vsel %vm774_vm2, %v2266_v28, 0.0 }
 0x2da   : > { %1621 = vpow2.f32 %v863_v40  ;;  %v859_v19 = vmul.f32 1.442695, %v833_v32  ;;  %896 = vadd.xlane.f32.xlu0 %v895_v12 }
 0x2db   : > { %1510 = vmatmul.msk.bf16.vlgmr.msra.gmra.mxu3 %vm969_vm4, %v953_v58 }
 0x2dc   : > { %1623 = vpow2.f32 %v859_v19  ;;  %1194 = vmatpush.bf16.msra.mxu3 %v1185_v7 }
 0x2dd   : > { %v819_v57 = vpop.xlane.xlu1 %818  ;;  %1625 = vpow2.f32 %v869_v59 }
 0x2de   : > { %v837_v20 = vsub.f32 %v2212_v15, %v819_v57 }
 0x2df   : > { %v816_v62 = vpop.xlane.xlu0 %815 }
 0x2e0   : > { %v2276_v61 = vpop.eup %1621  ;;  %v867_v60 = vmul.f32 1.442695, %v837_v20  ;;  %v836_v26 = vsub.f32 %v2215_v16, %v816_v62 }
 0x2e1   : > { %v907_v5 = vsel %vm774_vm2, %v2276_v61, 0.0 }
 0x2e2   : > { %v2280_v36 = vpop.eup %1623  ;;  %1627 = vpow2.f32 %v867_v60  ;;  %908 = vadd.xlane.f32.xlu0 %v907_v5  ;;  %v865_v39 = vmul.f32 1.442695, %v836_v26 }
 0x2e3   : > { %v901_v38 = vsel %vm774_vm2, %v2280_v36, 0.0  ;;  %v2285_v15 = vpop.eup %1625 }
 0x2e4   : > { %902 = vadd.xlane.f32.xlu2 %v901_v38  ;;  %1629 = vpow2.f32 %v865_v39  ;;  %v916_v44 = vsel %vm774_vm2, %v2285_v15, 0.0 }
 0x2e8   : > { %v2287_v4 = vpop.eup %1627 }
 0x2e9   : > { %v913_v43 = vsel %vm774_vm2, %v2287_v4, 0.0 }
 0x2ea   : > { %914 = vadd.xlane.f32.xlu1 %v913_v43  ;;  %v2293_v16 = vpop.eup %1629 }
 0x2eb   : > { %v910_v14 = vsel %vm774_vm2, %v2293_v16, 0.0 }
 0x2ec   : > { %917 = vadd.xlane.f32.xlu2 %v916_v44 }
 0x2f4   : > { %911 = vadd.xlane.f32.xlu2 %v910_v14 }
 0x2f6   : > { %1263 = vrot.lane.b32.xlu0 %v2000_v8, %s1759_s5 }
 0x2fe   : > { %1284 = vrot.lane.b32.xlu0 %v2026_v34, %s1759_s5 }
 0x303   : > { %1242 = vrot.lane.b32.xlu1 %v1997_v6, %s1759_s5 }
 0x30c   : > { %1221 = vrot.lane.b32.xlu2 %v2014_v30, %s1759_s5  ;;  %s1387_s5 = sshll.u32 %s1384_s25, 4  ;;  %s1388_s5 = int_to_ptr.hbm [resolvable:$true] %s1387_s5 }
 0x30d   : > { %s1699_s29 = sshra.s32 %s1388_s5, 4  ;;  %s1700_s29 = int_to_ptr.hbm [resolvable:$true] %s1699_s29 }
 0x30e   : > { %s1701_s6 = scalar_lea.hbm %s1700_s29, 8  ;;  %p1706_p1 = scmp.lt.s32.totalorder %s1700_s29, %s2399_s4 }
 0x30f   : > { %p1702_p9 = scmp.ne.s32.totalorder %s1700_s29, %s1701_s6  ;;  %p1707_p3 = scmp.lt.s32.totalorder %s1705_s14, %s1701_s6 }
 0x311   : > { %p1703_p13 = pnand %p1702_p9, %p1840_p11  ;;  %p1708_p4 = por %p1707_p3, %p1706_p1 }
 0x313   : > { %p1704_p0 = pneg %p1703_p13 }
 0x315   : > { %p1709_p7 = pnand %p1708_p4, %p1704_p0 }
 0x316   : > { %v891_v47 = vpop.xlane.xlu1 %890 }
 0x317   : > { %1631 = vrcp.f32 %v891_v47 }
 0x31d   : > { %v1632_v35 = vpop.eup %1631 }
 0x31e   : > { %v941_v48 = vmul.f32 %v1632_v35, %v2223_v23  ;;  %v885_v9 = vpop.xlane.xlu0 %884 }
 0x31f   : > { %1633 = vrcp.f32 %v885_v9 }
 0x320   : > { %v957_v29 = vpack.c.bf16 %v941_v48, %v941_v48 }
 0x322   : > { %1514 = vmatmul.msk.bf16.vlgmr.msrb.gmra.mxu3 %vm969_vm4, %v957_v29 }
 0x325   : > { %v1634_v8 = vpop.eup %1633 }
 0x326   : > { %v939_v50 = vmul.f32 %v1634_v8, %v2227_v63 }
 0x328   : > { %v955_v34 = vpack.c.bf16 %v939_v50, %v939_v50  ;;  %v894_v31 = vpop.xlane.xlu2 %893 }
 0x329   : > { %1635 = vrcp.f32 %v894_v31 }
 0x32a   : > { %1512 = vmatmul.msk.bf16.vlgmr.msrb.gmra.mxu1 %vm969_vm4, %v955_v34 }
 0x32f   : > { %v1636_v6 = vpop.eup %1635 }
 0x330   : > { %v942_v30 = vmul.f32 %v1636_v6, %v2233_v25  ;;  %v888_v51 = vpop.xlane.xlu2 %887 }
 0x331   : > { %1637 = vrcp.f32 %v888_v51 }
 0x332   : > { %v958_v52 = vpack.c.bf16 %v942_v30, %v942_v30 }
 0x334   : > { %1515 = vmatmul.msk.bf16.vlgmr.msra.gmra.mxu0 %vm969_vm4, %v958_v52 }
 0x337   : > { %v1638_v23 = vpop.eup %1637 }
 0x338   : > { %v940_v46 = vmul.f32 %v1638_v23, %v2238_v33  ;;  %v906_v56 = vpop.xlane.xlu1 %905 }
 0x339   : > { %1639 = vrcp.f32 %v906_v56 }
 0x33a   : > { %v956_v41 = vpack.c.bf16 %v940_v46, %v940_v46 }
 0x33c   : > { %1513 = vmatmul.msk.bf16.vlgmr.msrb.gmra.mxu2 %vm969_vm4, %v956_v41 }
 0x33f   : > { %v1640_v63 = vpop.eup %1639 }
 0x340   : > { %v946_v0 = vmul.f32 %v1640_v63, %v2242_v45 }
 0x342   : > { %v962_v1 = vpack.c.bf16 %v946_v0, %v946_v0 }
 0x344   : > { %1519 = vmatmul.msk.bf16.vlgmr.msrb.gmra.mxu0 %vm969_vm4, %v962_v1 }
 0x348   : > { %v900_v25 = vpop.xlane.xlu1 %899 }
 0x349   : > { %1641 = vrcp.f32 %v900_v25 }
 0x34d   : > { %v897_v42 = vpop.xlane.xlu0 %896 }
 0x34e   : > { %1643 = vrcp.f32 %v897_v42  ;;  %v2315_v2 = vpop.f32.mrf.mxu0 }
 0x34f   : > { %v1642_v37 = vpop.eup %1641  ;;  %v2317_v3 = vpop.f32.mrf.mxu2 }
 0x350   : > { %v944_v33 = vmul.f32 %v1642_v37, %v2257_v49  ;;  %v2320_v10 = vpop.f32.mrf.mxu1 }
 0x352   : > { %v960_v11 = vpack.c.bf16 %v944_v33, %v944_v33 }
 0x354   : > { %v1644_v18 = vpop.eup %1643  ;;  %1517 = vmatmul.msk.bf16.vlgmr.msra.gmra.mxu2 %vm969_vm4, %v960_v11 }
 0x355   : > { %v943_v45 = vmul.f32 %v1644_v18, %v2266_v28  ;;  %v909_v40 = vpop.xlane.xlu0 %908 }
 0x356   : > { %v1051_v24 = vpop.f32.mrf.mxu0 }
 0x357   : > { %v959_v55 = vpack.c.bf16 %v943_v45, %v943_v45  ;;  %v1009_v27 = vpop.f32.mrf.mxu2  ;;  %v903_v54 = vpop.xlane.xlu2 %902 }
 0x358   : > { %1645 = vrcp.f32 %v903_v54  ;;  %v988_v22 = vpop.f32.mrf.mxu1 }
 0x359   : > { %1516 = vmatmul.msk.bf16.vlgmr.msra.gmra.mxu1 %vm969_vm4, %v959_v55 }
 0x35d   : > { %v915_v58 = vpop.xlane.xlu1 %914 }
 0x35e   : > { %v1646_v13 = vpop.eup %1645  ;;  %v2325_v17 = vpop.f32.mrf.mxu3  ;;  %1647 = vrcp.f32 %v915_v58 }
 0x35f   : > { %v945_v49 = vmul.f32 %v1646_v13, %v2280_v36  ;;  %v918_v21 = vpop.xlane.xlu2 %917  ;;  %1649 = vrcp.f32 %v909_v40 }
 0x360   : > { %1651 = vrcp.f32 %v918_v21 }
 0x361   : > { %v961_v32 = vpack.c.bf16 %v945_v49, %v945_v49 }
 0x363   : > { %1518 = vmatmul.msk.bf16.vlgmr.msra.gmra.mxu3 %vm969_vm4, %v961_v32 }
 0x364   : > { %v1648_v7 = vpop.eup %1647 }
 0x365   : > { %v1650_v59 = vpop.eup %1649  ;;  %v949_v20 = vmul.f32 %v1648_v7, %v2287_v4 }
 0x366   : > { %v1030_v28 = vpop.f32.mrf.mxu3  ;;  %v1652_v57 = vpop.eup %1651  ;;  %v947_v62 = vmul.f32 %v1650_v59, %v2276_v61 }
 0x367   : > { %v912_v53 = vpop.xlane.xlu2 %911  ;;  %v950_v60 = vmul.f32 %v1652_v57, %v2285_v15  ;;  %v965_v39 = vpack.c.bf16 %v949_v20, %v949_v20 }
 0x368   : > { %v1264_v12 = vpop.permute.xlu0 %1263  ;;  %1653 = vrcp.f32 %v912_v53  ;;  %v963_v44 = vpack.c.bf16 %v947_v62, %v947_v62 }
 0x369   : > { %v1269_v19 = vsel %vm973_vm3, %v1264_v12, 0  ;;  %v966_v14 = vpack.c.bf16 %v950_v60, %v950_v60 }
 0x36a   : > { %1278 = vmatpush.bf16.msrb.mxu3 %v1269_v19 }
 0x36e   : > { %v1654_v38 = vpop.eup %1653 }
 0x36f   : > { %v1222_v5 = vpop.permute.xlu2 %1221  ;;  %v948_v4 = vmul.f32 %v1654_v38, %v2293_v16 }
 0x370   : > { %v1227_v36 = vsel %vm973_vm3, %v1222_v5, 0  ;;  %v1285_v26 = vpop.permute.xlu0 %1284 }
 0x371   : > { %v1290_v43 = vsel %vm973_vm3, %v1285_v26, 0  ;;  %1236 = vmatpush.bf16.msrb.mxu1 %v1227_v36  ;;  %v964_v47 = vpack.c.bf16 %v948_v4, %v948_v4 }
 0x372   : > { %1299 = vmatpush.bf16.msra.mxu0 %v1290_v43 }
 0x373   : > { %1522 = vmatmul.msk.bf16.vlgmr.msrb.gmra.mxu3 %vm969_vm4, %v965_v39 }
 0x374   : > { %1520 = vmatmul.msk.bf16.vlgmr.msrb.gmra.mxu1 %vm969_vm4, %v963_v44 }
 0x375   : > { %1523 = vmatmul.msk.bf16.vlgmr.msra.gmra.mxu0 %vm969_vm4, %v966_v14  ;;  %v1243_v61 = vpop.permute.xlu1 %1242 }
 0x376   : > { %v1248_v15 = vsel %vm973_vm3, %v1243_v61, 0 }
 0x377   : > { %1257 = vmatpush.bf16.msrb.mxu2 %v1248_v15 }
 0x37a   : > { %1521 = vmatmul.msk.bf16.vlgmr.msrb.gmra.mxu2 %vm969_vm4, %v964_v47 }
 0x3a5   : > { %v1112_v35 = vpop.f32.mrf.mxu3 }
 0x3a6   : > { %1313 = vrot.lane.b32.xlu0 %v1112_v35, %s1760_s12 }
 0x3a7   : > { %v1070_v48 = vpop.f32.mrf.mxu1 }
 0x3a8   : > { %1309 = vrot.lane.b32.xlu1 %v1070_v48, %s1760_s12 }
 0x3ad   : > { %v1114_v9 = vpop.f32.mrf.mxu3 }
 0x3af   : > { %v1072_v29 = vpop.f32.mrf.mxu1 }
 0x3b1   : > { %v1133_v8 = vpop.f32.mrf.mxu0 }
 0x3b2   : > { %1315 = vrot.lane.b32.xlu1 %v1133_v8, %s1760_s12 }
 0x3b9   : > { %v1135_v16 = vpop.f32.mrf.mxu0 }
 0x3bf   : > { %v1091_v50 = vpop.f32.mrf.mxu2 }
 0x3c0   : > { %1311 = vrot.lane.b32.xlu2 %v1091_v50, %s1760_s12 }
 0x3c1   : > { %v1217_v34 = vpop.f32.mrf.mxu0 }
 0x3c7   : > { %v1093_v31 = vpop.f32.mrf.mxu2 }
 0x3c9   : > { %v1219_v6 = vpop.f32.mrf.mxu0 }
 0x3d6   : > { %v1154_v30 = vpop.f32.mrf.mxu1 }
 0x3d7   : > { %1325 = vrot.lane.b32.xlu2 %v1154_v30, %s1761_s9  ;;  %v1175_v51 = vpop.f32.mrf.mxu2 }
 0x3d8   : > { %1327 = vrot.lane.b32.xlu0 %v1175_v51, %s1761_s9 }
 0x3de   : > { %v1156_v52 = vpop.f32.mrf.mxu1 }
 0x3df   : > { %1331 = vrot.lane.b32.xlu2 %v1217_v34, %s1761_s9  ;;  %v1177_v23 = vpop.f32.mrf.mxu2 }
 0x3e6   : > { %v1196_v46 = vpop.f32.mrf.mxu3 }
 0x3e7   : > { %1329 = vrot.lane.b32.xlu1 %v1196_v46, %s1761_s9 }
 0x3ee   : > { %v1198_v56 = vpop.f32.mrf.mxu3 }
 0x3f1   : > { %v1238_v41 = vpop.f32.mrf.mxu1 }
 0x3f2   : > { %v1301_v63 = vpop.f32.mrf.mxu0  ;;  %1341 = vrot.lane.b32.xlu0 %v1238_v41, %s1762_s11 }
 0x3f6   : > { %v1280_v0 = vpop.f32.mrf.mxu3 }
 0x3f7   : > { %1345 = vrot.lane.b32.xlu2 %v1280_v0, %s1762_s11 }
 0x3f9   : > { %v1240_v1 = vpop.f32.mrf.mxu1 }
 0x3fa   : > { %v1303_v25 = vpop.f32.mrf.mxu0  ;;  %1347 = vrot.lane.b32.xlu0 %v1301_v63, %s1762_s11 }
 0x3fd   : > { %v1259_v42 = vpop.f32.mrf.mxu2 }
 0x3fe   : > { %v1282_v37 = vpop.f32.mrf.mxu3  ;;  %1343 = vrot.lane.b32.xlu1 %v1259_v42, %s1762_s11 }
 0x405   : > { %v1261_v33 = vpop.f32.mrf.mxu2 }
 0x418   : > { %v1314_v27 = vpop.permute.xlu0 %1313 }
 0x419   : > { %v1355_v54 = vsel %vm394_vm1, %v2325_v17, %v1314_v27 }
 0x41a   : > { %v1312_v11 = vpop.permute.xlu2 %1311  ;;  %v1310_v45 = vpop.permute.xlu1 %1309 }
 0x41b   : > { %v1353_v32 = vsel %vm394_vm1, %v2320_v10, %v1310_v45  ;;  %v1354_v7 = vsel %vm394_vm1, %v2317_v3, %v1312_v11 }
 0x424   : > { %v1316_v24 = vpop.permute.xlu1 %1315 }
 0x425   : > { %v1356_v53 = vsel %vm394_vm1, %v2315_v2, %v1316_v24 }
 0x431   : > { %v1326_v18 = vpop.permute.xlu2 %1325 }
 0x432   : > { %v1358_v58 = vsel %vm1357_vm6, %v1353_v32, %v1326_v18 }
 0x439   : > { %v1332_v55 = vpop.permute.xlu2 %1331 }
 0x43a   : > { %v1361_v12 = vsel %vm1357_vm6, %v1356_v53, %v1332_v55 }
 0x44a   : > { %v1328_v40 = vpop.permute.xlu0 %1327 }
 0x44b   : > { %v1359_v59 = vsel %vm1357_vm6, %v1354_v7, %v1328_v40 }
 0x451   : > { %v1346_v13 = vpop.permute.xlu2 %1345 }
 0x459   : > { %v1330_v22 = vpop.permute.xlu1 %1329 }
 0x45a   : > { %v1360_v49 = vsel %vm1357_vm6, %v1355_v54, %v1330_v22 }
 0x45b   : > { %v1365_v21 = vsel %vm1362_vm5, %v1360_v49, %v1346_v13 }
 0x45c   : > { %1370 = vst.msk [vmem:[%s232_s26 + $0x4] sm:$0x3] %vm1367_vm7, %v1365_v21 }
 0x464   : > { %v1342_v28 = vpop.permute.xlu0 %1341 }
 0x465   : > { %v1363_v17 = vsel %vm1362_vm5, %v1358_v58, %v1342_v28 }
 0x466   : > { %1368 = vst.msk [vmem:[%s232_s26] sm:$0x3] %vm1367_vm7, %v1363_v17 }
 0x46c   : > { %v1348_v10 = vpop.permute.xlu0 %1347 }
 0x46d   : > { %v1366_v19 = vsel %vm1362_vm5, %v1361_v12, %v1348_v10 }
 0x46e   : > { %1371 = vst.msk [vmem:[%s232_s26 + $0x6] sm:$0x3] %vm1367_vm7, %v1366_v19 }
 0x470   : > { %v1344_v57 = vpop.permute.xlu1 %1343 }
 0x471   : > { %v1364_v2 = vsel %vm1362_vm5, %v1359_v59, %v1344_v57 }
 0x472   : > { %1369 = vst.msk [vmem:[%s232_s26 + $0x2] sm:$0x3] %vm1367_vm7, %v1364_v2 }
 0x473   : > { %1712 = shalt.err (!%p1709_p7)
}
 0x474   : > { %s1763_s7 = smov 32   ;;  %s1764_s11 = smov 2  }
 0x475   : > { %1534 = dma.vmem_to_hbm [thread:$0]  (%p1840_p11), %s1386_s30, 128, %s1388_s5, %s1373_s19, %s1763_s7, %s1763_s7, %s1764_s11  }
 0x476 PF: > { %s1402_s13 = sand.u32 1, %s1739_s15   ;;  %p2405_p5 = scmp.ge.s32.totalorder %s1751_s18, 2 }
 0x477   : > { %s1403_s26 = scalar_lea.sflag [#allocation4], %s1402_s13 }
 0x478   : > { %p1541_p8 = pnand %p2405_p5, %p1844_p12 }
 0x47a   : > { %p1542_p10 = pneg %p1541_p8 }
 0x47c   : > { %1734 = dma.done.wait (%p1542_p10), %s1403_s26, 128  }
 0x47d   : > { %1736 = vsyncadd (%p1542_p10), %s1403_s26, 4294967168  ;;  %p17_p2 = scmp.ge.s32.totalorder %s1815_s21, 4   ;;  %s2406_s15 = smov %s1743_s16 }
 0x47e   : > { %s2407_s16 = smov %s1747_s17  ;;  %s2408_s17 = smov %s1827_s24 }
 0x47f   : > { %s2409_s18 = smov %s1815_s21  ;;  %19 = sbr.rel (!%p17_p2) target bundleno = 5 (0x5), region = 87 }
 0x484   :  { %1409 = vsyncpa [#allocation3], 1 }
 0x485   :  { %1411 = vsyncpa [#allocation3 + $0x1], 1 }
 0x486   :  { %1412 = vsyncpa [#allocation4], 1 }
 0x487   :  { %1414 = vsyncpa [#allocation4 + $0x1], 1 }

</bundles_post_ra>
